<compile_context>
chip_gen: v6e
topology: v6e:2x2x1
jax: 0.10.0
libtpu: 0.0.40
codegen_flags: <defaults>
</compile_context>

<pallas_src>
import functools

import jax
import jax.numpy as jnp
from jax import lax
from jax.experimental import pallas as pl
from jax.experimental.pallas import tpu as pltpu

LOG_STD_MIN = -5.0
LOG_STD_MAX = 2.0
LANE = 128
SUBLANE = 8


def _round_up(x, m):
    return ((x + m - 1) // m) * m


def sac_actor_kernel(obs_ref,
                     w1_ref, b1_ref,
                     w2_ref, b2_ref,
                     wh_ref, bh_ref,
                     out_ref, *, act_dim):
    """Fused forward: 2-layer ReLU MLP (latent_pi) + fused (mu | log_std) head + squash.

    out_ref columns [0, act_dim)           -> mean_actions
    out_ref columns [act_dim, 2*act_dim)   -> tanh-squashed log_std
    out_ref columns [2*act_dim, head_pad)  -> zero padding
    """
    # bf16 operands for the MXU, f32 accumulation.
    x = obs_ref[...].astype(jnp.bfloat16)

    # latent_pi: Linear -> ReLU -> Linear -> ReLU
    h = jnp.dot(x, w1_ref[...], preferred_element_type=jnp.float32) + b1_ref[...]
    h = jnp.maximum(h, 0.0).astype(jnp.bfloat16)
    h = jnp.dot(h, w2_ref[...], preferred_element_type=jnp.float32) + b2_ref[...]
    h = jnp.maximum(h, 0.0).astype(jnp.bfloat16)

    # Fused heads: one MXU pass produces [mu | log_std | 0...] in a single lane-dense slab.
    y = jnp.dot(h, wh_ref[...], preferred_element_type=jnp.float32) + bh_ref[...]

    # Column-masked tanh squash of the log_std columns; mu columns pass through.
    col = lax.broadcasted_iota(jnp.int32, y.shape, 1)
    is_log_std = (col >= act_dim) & (col < 2 * act_dim)
    squashed = LOG_STD_MIN + 0.5 * (LOG_STD_MAX - LOG_STD_MIN) * (jnp.tanh(y) + 1.0)
    out_ref[...] = jnp.where(is_log_std, squashed, y)


def prepare_params(params):
    """One-time prep: pad feature dims to lane width, fuse heads, cast weights to bf16.

    Input params are unpadded (in, out)-layout f32 weights / (1, out) biases.
    Returns (padded_params, act_dim).
    """
    w1, b1, w2, b2, wmu, bmu, wls, bls = params
    obs_dim, h1 = w1.shape
    h2 = w2.shape[1]
    act_dim = int(wmu.shape[1])

    h1_p = _round_up(h1, LANE)
    h2_p = _round_up(h2, LANE)
    head_p = _round_up(2 * act_dim, LANE)

    def pad2(a, rows, cols):
        return jnp.pad(a, ((0, rows - a.shape[0]), (0, cols - a.shape[1])))

    # Zero padding is exact: padded hidden cols get zero weight/bias -> relu(0)=0, and
    # padded weight rows multiply those zero activations.
    w1_pd = pad2(w1, obs_dim, h1_p).astype(jnp.bfloat16)   # rows stay at natural obs_dim
    b1_pd = pad2(b1, 1, h1_p)                               # biases stay f32
    w2_pd = pad2(w2, h1_p, h2_p).astype(jnp.bfloat16)
    b2_pd = pad2(b2, 1, h2_p)
    wh_pd = pad2(jnp.concatenate([wmu, wls], axis=1), h2_p, head_p).astype(jnp.bfloat16)
    bh_pd = pad2(jnp.concatenate([bmu, bls], axis=1), 1, head_p)

    padded = (w1_pd, b1_pd, w2_pd, b2_pd, wh_pd, bh_pd)
    return jax.tree_util.tree_map(jax.device_put, padded), act_dim


@functools.partial(jax.jit, static_argnames=("act_dim", "block_b"))
def sac_actor_forward(obs, padded_params, *, act_dim, block_b=1024):
    """obs: (B, obs_dim) float32. padded_params: output of prepare_params()."""
    w1, b1, w2, b2, wh, bh = padded_params
    B, obs_dim = obs.shape
    head_p = wh.shape[1]

    # Batch tiling: big tiles amortize per-step pipeline overhead; for non-tiny batches
    # keep at least 2 grid steps so the "parallel" axis shards across v7x's 2 TensorCores.
    target = _round_up(B, SUBLANE)
    bb = min(block_b, target)
    if bb == target and target >= 128:
        bb = _round_up((target + 1) // 2, SUBLANE)
    B_pad = _round_up(B, bb)

    obs_pd = obs if B_pad == B else jnp.pad(obs, ((0, B_pad - B), (0, 0)))

    grid = (B_pad // bb,)

    def const_spec(arr):
        # Same full block at every grid step (weights stay resident in VMEM).
        return pl.BlockSpec(arr.shape, lambda i: (0, 0))

    out = pl.pallas_call(
        functools.partial(sac_actor_kernel, act_dim=act_dim),
        out_shape=jax.ShapeDtypeStruct((B_pad, head_p), jnp.float32),
        grid_spec=pltpu.PrefetchScalarGridSpec(
            num_scalar_prefetch=0,
            grid=grid,
            in_specs=[
                pl.BlockSpec((bb, obs_dim), lambda i: (i, 0)),  # obs tile, natural last dim
                const_spec(w1), const_spec(b1),
                const_spec(w2), const_spec(b2),
                const_spec(wh), const_spec(bh),
            ],
            out_specs=pl.BlockSpec((bb, head_p), lambda i: (i, 0)),
        ),
        compiler_params=pltpu.CompilerParams(
            dimension_semantics=("parallel",),
        ),
    )(obs_pd, w1, b1, w2, b2, wh, bh)

    # Slice away batch padding and split the fused slab.
    mean = out[:B, :act_dim]
    log_std = out[:B, act_dim:2 * act_dim]
    return mean, log_std


def init_params(key, obs_dim, hidden_sizes, action_dim):
    """Deterministic synthetic init mirroring nn.Linear shapes (stored as (in, out))."""
    dims = [obs_dim] + list(hidden_sizes)
    params = []
    keys = jax.random.split(key, 2 * (len(hidden_sizes) + 2))
    ki = 0
    for d_in, d_out in zip(dims[:-1], dims[1:]):
        bound = 1.0 / jnp.sqrt(d_in)
        w = jax.random.uniform(keys[ki], (d_in, d_out), jnp.float32, -bound, bound); ki += 1
        b = jax.random.uniform(keys[ki], (1, d_out), jnp.float32, -bound, bound); ki += 1
        params += [w, b]
    last = dims[-1]
    bound = 1.0 / jnp.sqrt(last)
    wmu = jax.random.uniform(keys[ki], (last, action_dim), jnp.float32, -bound, bound); ki += 1
    bmu = jax.random.uniform(keys[ki], (1, action_dim), jnp.float32, -bound, bound); ki += 1
    wls = jax.random.uniform(keys[ki], (last, action_dim), jnp.float32, -bound, bound); ki += 1
    bls = jax.random.uniform(keys[ki], (1, action_dim), jnp.float32, -bound, bound); ki += 1
    return tuple(params) + (wmu, bmu, wls, bls)


def reference_forward(obs, params):
    """Pure-JAX f32 reference matching the PyTorch SACActor.forward."""
    w1, b1, w2, b2, wmu, bmu, wls, bls = params
    h = jnp.maximum(obs @ w1 + b1, 0.0)
    h = jnp.maximum(h @ w2 + b2, 0.0)
    mean = h @ wmu + bmu
    ls = jnp.tanh(h @ wls + bls)
    ls = LOG_STD_MIN + 0.5 * (LOG_STD_MAX - LOG_STD_MIN) * (ls + 1.0)
    return mean, ls


if __name__ == "__main__":
    # Small shapes consistent with the module: flat observation -> MLP -> action heads.
    # B=10 (not a multiple of 8) exercises the batch-padding path.
    B = 10
    OBS_DIM = 32    # np.prod(observation_space.shape)
    HIDDEN = [64, 64]
    ACT_DIM = 8     # np.prod(action_space.shape)

    key = jax.random.PRNGKey(0)
    k_obs, k_par = jax.random.split(key)
    obs = jax.random.normal(k_obs, (B, OBS_DIM), dtype=jnp.float32)
    params = init_params(k_par, OBS_DIM, HIDDEN, ACT_DIM)

    padded_params, act_dim = prepare_params(params)   # one-time, outside the hot path

    mean, log_std = sac_actor_forward(obs, padded_params, act_dim=act_dim)
    jax.block_until_ready((mean, log_std))

    mean_ref, log_std_ref = reference_forward(obs, params)
    assert mean.shape == (B, ACT_DIM) and log_std.shape == (B, ACT_DIM)
    # bf16 operands with f32 accumulation -> loosened tolerance vs. the f32 reference.
    assert jnp.allclose(mean, mean_ref, atol=3e-2, rtol=3e-2)
    assert jnp.allclose(log_std, log_std_ref, atol=3e-2, rtol=3e-2)
    assert bool(jnp.all(log_std >= LOG_STD_MIN - 1e-4)) and bool(jnp.all(log_std <= LOG_STD_MAX + 1e-4))

    print("KERNEL_OK")
</pallas_src>

<mosaic_0001>
module attributes {stable_mosaic.version = 11 : i64} {
  func.func @sac_actor_kernel(%arg0: i32, %arg1: memref<16x32xf32, #tpu.memory_space<vmem>>, %arg2: memref<32x128xbf16, #tpu.memory_space<vmem>>, %arg3: memref<1x128xf32, #tpu.memory_space<vmem>>, %arg4: memref<128x128xbf16, #tpu.memory_space<vmem>>, %arg5: memref<1x128xf32, #tpu.memory_space<vmem>>, %arg6: memref<128x128xbf16, #tpu.memory_space<vmem>>, %arg7: memref<1x128xf32, #tpu.memory_space<vmem>>, %arg8: memref<16x128xf32, #tpu.memory_space<vmem>>) attributes {dimension_semantics = [#tpu.dimension_semantics<parallel>], iteration_bounds = array<i64: 1>, scalar_prefetch = 0 : i64, scratch_operands = 0 : i64, tpu.core_type = #tpu.core_type<tc>, window_params = [{transform_indices = @transform_0, window_bounds = array<i64: 16, 32>}, {pipeline_mode = #tpu.pipeline_mode<synchronous>, transform_indices = @transform_1, window_bounds = array<i64: 32, 128>}, {pipeline_mode = #tpu.pipeline_mode<synchronous>, transform_indices = @transform_2, window_bounds = array<i64: 1, 128>}, {pipeline_mode = #tpu.pipeline_mode<synchronous>, transform_indices = @transform_3, window_bounds = array<i64: 128, 128>}, {pipeline_mode = #tpu.pipeline_mode<synchronous>, transform_indices = @transform_4, window_bounds = array<i64: 1, 128>}, {pipeline_mode = #tpu.pipeline_mode<synchronous>, transform_indices = @transform_5, window_bounds = array<i64: 128, 128>}, {pipeline_mode = #tpu.pipeline_mode<synchronous>, transform_indices = @transform_6, window_bounds = array<i64: 1, 128>}, {transform_indices = @transform_7, window_bounds = array<i64: 16, 128>}]} {
    %c0 = arith.constant 0 : index
    %c0_0 = arith.constant 0 : index
    %0 = vector.load %arg1[%c0, %c0_0] : memref<16x32xf32, #tpu.memory_space<vmem>>, vector<16x32xf32>
    %1 = arith.truncf %0 : vector<16x32xf32> to vector<16x32xbf16>
    %c0_1 = arith.constant 0 : index
    %c0_2 = arith.constant 0 : index
    %2 = vector.load %arg2[%c0_1, %c0_2] : memref<32x128xbf16, #tpu.memory_space<vmem>>, vector<32x128xbf16>
    %cst = arith.constant dense<0.000000e+00> : vector<16x128xf32>
    %3 = tpu.matmul %1, %2, %cst {dimension_numbers = #tpu.dot_dimension_numbers<[1], [0], [0], [1], [0, 0, 1, 1], [], []>} : vector<16x32xbf16>, vector<32x128xbf16>, vector<16x128xf32> -> vector<16x128xf32>
    %c0_3 = arith.constant 0 : index
    %c0_4 = arith.constant 0 : index
    %4 = vector.load %arg3[%c0_3, %c0_4] : memref<1x128xf32, #tpu.memory_space<vmem>>, vector<1x128xf32>
    %5 = vector.broadcast %4 : vector<1x128xf32> to vector<16x128xf32>
    %6 = arith.addf %3, %5 : vector<16x128xf32>
    %cst_5 = arith.constant 0.000000e+00 : f32
    %7 = vector.broadcast %cst_5 : f32 to vector<16x128xf32>
    %8 = arith.maximumf %6, %7 : vector<16x128xf32>
    %9 = arith.truncf %8 : vector<16x128xf32> to vector<16x128xbf16>
    %c0_6 = arith.constant 0 : index
    %c0_7 = arith.constant 0 : index
    %10 = vector.load %arg4[%c0_6, %c0_7] : memref<128x128xbf16, #tpu.memory_space<vmem>>, vector<128x128xbf16>
    %cst_8 = arith.constant dense<0.000000e+00> : vector<16x128xf32>
    %11 = tpu.matmul %9, %10, %cst_8 {dimension_numbers = #tpu.dot_dimension_numbers<[1], [0], [0], [1], [0, 0, 1, 1], [], []>} : vector<16x128xbf16>, vector<128x128xbf16>, vector<16x128xf32> -> vector<16x128xf32>
    %c0_9 = arith.constant 0 : index
    %c0_10 = arith.constant 0 : index
    %12 = vector.load %arg5[%c0_9, %c0_10] : memref<1x128xf32, #tpu.memory_space<vmem>>, vector<1x128xf32>
    %13 = vector.broadcast %12 : vector<1x128xf32> to vector<16x128xf32>
    %14 = arith.addf %11, %13 : vector<16x128xf32>
    %cst_11 = arith.constant 0.000000e+00 : f32
    %15 = vector.broadcast %cst_11 : f32 to vector<16x128xf32>
    %16 = arith.maximumf %14, %15 : vector<16x128xf32>
    %17 = arith.truncf %16 : vector<16x128xf32> to vector<16x128xbf16>
    %c0_12 = arith.constant 0 : index
    %c0_13 = arith.constant 0 : index
    %18 = vector.load %arg6[%c0_12, %c0_13] : memref<128x128xbf16, #tpu.memory_space<vmem>>, vector<128x128xbf16>
    %cst_14 = arith.constant dense<0.000000e+00> : vector<16x128xf32>
    %19 = tpu.matmul %17, %18, %cst_14 {dimension_numbers = #tpu.dot_dimension_numbers<[1], [0], [0], [1], [0, 0, 1, 1], [], []>} : vector<16x128xbf16>, vector<128x128xbf16>, vector<16x128xf32> -> vector<16x128xf32>
    %c0_15 = arith.constant 0 : index
    %c0_16 = arith.constant 0 : index
    %20 = vector.load %arg7[%c0_15, %c0_16] : memref<1x128xf32, #tpu.memory_space<vmem>>, vector<1x128xf32>
    %21 = vector.broadcast %20 : vector<1x128xf32> to vector<16x128xf32>
    %22 = arith.addf %19, %21 : vector<16x128xf32>
    %23 = tpu.iota {dimensions = array<i32: 1>} : vector<16x128xi32>
    %c8_i32 = arith.constant 8 : i32
    %24 = vector.broadcast %c8_i32 : i32 to vector<16x128xi32>
    %25 = arith.cmpi sge, %23, %24 : vector<16x128xi32>
    %c16_i32 = arith.constant 16 : i32
    %26 = vector.broadcast %c16_i32 : i32 to vector<16x128xi32>
    %27 = arith.cmpi slt, %23, %26 : vector<16x128xi32>
    %28 = arith.andi %25, %27 : vector<16x128xi1>
    %29 = math.tanh %22 : vector<16x128xf32>
    %cst_17 = arith.constant 1.000000e+00 : f32
    %30 = vector.broadcast %cst_17 : f32 to vector<16x128xf32>
    %31 = arith.addf %29, %30 : vector<16x128xf32>
    %cst_18 = arith.constant 3.500000e+00 : f32
    %32 = vector.broadcast %cst_18 : f32 to vector<16x128xf32>
    %33 = arith.mulf %32, %31 : vector<16x128xf32>
    %cst_19 = arith.constant -5.000000e+00 : f32
    %34 = vector.broadcast %cst_19 : f32 to vector<16x128xf32>
    %35 = arith.addf %34, %33 : vector<16x128xf32>
    %36 = arith.select %28, %35, %22 : vector<16x128xi1>, vector<16x128xf32>
    %c0_20 = arith.constant 0 : index
    %c0_21 = arith.constant 0 : index
    %37 = vector.load %arg8[%c0_20, %c0_21] : memref<16x128xf32, #tpu.memory_space<vmem>>, vector<16x128xf32>
    tpu.vector_store %arg8[%c0_20, %c0_21], %36 {strides = array<i32>} : memref<16x128xf32, #tpu.memory_space<vmem>>, vector<16x128xf32>,
    return
  }
  func.func @transform_0(%arg0: i32) -> (i32, i32) {
    %c0_i32 = arith.constant 0 : i32
    %c0_i32_0 = arith.constant 0 : i32
    return %arg0, %c0_i32 : i32, i32
  }
  func.func @transform_1(%arg0: i32) -> (i32, i32) {
    %c0_i32 = arith.constant 0 : i32
    %c0_i32_0 = arith.constant 0 : i32
    %c0_i32_1 = arith.constant 0 : i32
    return %c0_i32, %c0_i32_0 : i32, i32
  }
  func.func @transform_2(%arg0: i32) -> (i32, i32) {
    %c0_i32 = arith.constant 0 : i32
    %c0_i32_0 = arith.constant 0 : i32
    %c0_i32_1 = arith.constant 0 : i32
    return %c0_i32, %c0_i32_0 : i32, i32
  }
  func.func @transform_3(%arg0: i32) -> (i32, i32) {
    %c0_i32 = arith.constant 0 : i32
    %c0_i32_0 = arith.constant 0 : i32
    %c0_i32_1 = arith.constant 0 : i32
    return %c0_i32, %c0_i32_0 : i32, i32
  }
  func.func @transform_4(%arg0: i32) -> (i32, i32) {
    %c0_i32 = arith.constant 0 : i32
    %c0_i32_0 = arith.constant 0 : i32
    %c0_i32_1 = arith.constant 0 : i32
    return %c0_i32, %c0_i32_0 : i32, i32
  }
  func.func @transform_5(%arg0: i32) -> (i32, i32) {
    %c0_i32 = arith.constant 0 : i32
    %c0_i32_0 = arith.constant 0 : i32
    %c0_i32_1 = arith.constant 0 : i32
    return %c0_i32, %c0_i32_0 : i32, i32
  }
  func.func @transform_6(%arg0: i32) -> (i32, i32) {
    %c0_i32 = arith.constant 0 : i32
    %c0_i32_0 = arith.constant 0 : i32
    %c0_i32_1 = arith.constant 0 : i32
    return %c0_i32, %c0_i32_0 : i32, i32
  }
  func.func @transform_7(%arg0: i32) -> (i32, i32) {
    %c0_i32 = arith.constant 0 : i32
    %c0_i32_0 = arith.constant 0 : i32
    return %arg0, %c0_i32 : i32, i32
  }
}

</mosaic_0001>

<bundles_post_ra>
// kernel: sac_actor_forward.1
= control target key start
LH: loop header
LB: loop body
LE: loop exit
PB: predicated region body
PF: predicated region fallthrough
CT: control target
= control target key end

     0   :  { %12 = vsyncpa [#allocation3], 0  ;;  %s645_s0 = inlined_call_operand.vmem [shape: f32[16,32], index: 0, kind: input, shape index: {}]   ;;  %s646_s1 = inlined_call_operand.vmem [shape: bf16[32,128], index: 1, kind: input, shape index: {}]   ;;  %s647_s2 = inlined_call_operand.vmem [shape: f32[1,128], index: 2, kind: input, shape index: {}]   ;;  %s648_s3 = inlined_call_operand.hbm [shape: bf16[128,128], index: 3, kind: input, shape index: {}]   ;;  %s649_s4 = inlined_call_operand.vmem [shape: f32[1,128], index: 4, kind: input, shape index: {}]   ;;  %s650_s5 = inlined_call_operand.hbm [shape: bf16[128,128], index: 5, kind: input, shape index: {}]   ;;  %s651_s6 = inlined_call_operand.vmem [shape: f32[1,128], index: 6, kind: input, shape index: {}]   ;;  %s652_s7 = inlined_call_operand.vmem [shape: f32[16,128], index: 7, kind: output, shape index: {}]  }
   0x1   :  { %13 = vsyncpa [#allocation5], 0  ;;  %s542_s24 = smov [#allocation2]  }
   0x2   :  { %s25_s25 = sshll.u32 %s542_s24, 4  ;;  %s26_s25 = int_to_ptr.vmem [resolvable:$true] %s25_s25 }
   0x3   :  { %s506_s26 = scalar_lea.vmem %s26_s25, 1024  ;;  %p511_p1 = scmp.lt.s32.totalorder %s26_s25, %s26_s25 }
   0x4   :  { %p507_p0 = scmp.ne.s32.totalorder %s26_s25, %s506_s26  ;;  %p512_p2 = scmp.lt.s32.totalorder %s506_s26, %s506_s26 }
   0x6   :  { %p513_p3 = por %p512_p2, %p511_p1 }
   0x8   :  { %p514_p4 = pnand %p513_p3, %p507_p0 }
   0xa   :  { %517 = shalt.err (!%p514_p4)
}
   0xb   :  { %s543_s27 = smov 64   ;;  %s544_s28 = smov 4  }
   0xc   :  { %31 = dma.hbm_to_vmem [thread:$0]  %s648_s3, 1024, %s26_s25, [#allocation3], %s543_s27, %s543_s27, %s544_s28  }
   0xd   :  { %s545_s8 = smov [#allocation4]  }
   0xe   :  { %s39_s9 = sshll.u32 %s545_s8, 4  ;;  %s40_s9 = int_to_ptr.vmem [resolvable:$true] %s39_s9 }
   0xf   :  { %s526_s10 = scalar_lea.vmem %s40_s9, 1024  ;;  %p531_p6 = scmp.lt.s32.totalorder %s40_s9, %s40_s9 }
  0x10   :  { %p527_p5 = scmp.ne.s32.totalorder %s40_s9, %s526_s10  ;;  %p532_p7 = scmp.lt.s32.totalorder %s526_s10, %s526_s10 }
  0x12   :  { %p533_p8 = por %p532_p7, %p531_p6 }
  0x14   :  { %p534_p9 = pnand %p533_p8, %p527_p5 }
  0x16   :  { %537 = shalt.err (!%p534_p9)
}
  0x17   :  { %45 = dma.hbm_to_vmem [thread:$0]  %s650_s5, 1024, %s40_s9, [#allocation5], %s543_s27, %s543_s27, %s544_s28  }
  0x18   :  { %538 = dma.done.wait [#allocation3], 1024  }
  0x19   :  { %539 = vsyncadd [#allocation3], 4294966272 }
  0x1a   :  { %540 = dma.done.wait [#allocation5], 1024  }
  0x1b   :  { %541 = vsyncadd [#allocation5], 4294966272  ;;  %v546_v0 = vmov 0.0   ;;  %vm547_vm0 = vmmov 0   ;;  %v476_v1 = vld [vmem:[%s646_s1 + $0x8] sm:$0xff]   ;;  %v477_v2 = vld [vmem:[%s646_s1] sm:$0xff]   ;;  %v356_v49 = vlaneseq }
  0x1c   :  { %422 = vmatprep.subr.bf16.mxu0 %v546_v0  ;;  %426 = vmatprep.mubr.msk.bf16.mxu0 %vm547_vm0, %v546_v0  ;;  %v55_v3 = vld [vmem:[%s645_s0] sm:$0xff]  ;;  %v56_v4 = vld [vmem:[%s645_s0 + $0x8] sm:$0xff]  ;;  %v478_v5 = vld [vmem:[#allocation2 + $0x38] sm:$0xff]   ;;  %vm81_vm1 = vcmask 261120  }
  0x1d   :  { %430 = vmatprep.subr.bf16.mxu1 %v546_v0  ;;  %446 = vmatprep.mubr.msk.bf16.mxu1 %vm547_vm0, %v546_v0  ;;  %v57_v6 = vpack.c.bf16 %v56_v4, %v55_v3  ;;  %v479_v7 = vld [vmem:[#allocation2 + $0x30] sm:$0xff]   ;;  %v480_v8 = vld [vmem:[#allocation2 + $0x28] sm:$0xff]   ;;  %v481_v9 = vld [vmem:[#allocation2 + $0x20] sm:$0xff]   ;;  %v357_v50 = vand.u32 127, %v356_v49 }
  0x1e   :  { %423 = vmatpush3.bf16.msra.mxu0 %v476_v1  ;;  %431 = vmatpush3.bf16.msra.mxu1 %v478_v5  ;;  %v482_v10 = vld [vmem:[#allocation2 + $0x18] sm:$0xff]   ;;  %v483_v11 = vld [vmem:[#allocation2 + $0x10] sm:$0xff]   ;;  %v484_v12 = vld [vmem:[#allocation2 + $0x8] sm:$0xff]  }
  0x1f   :  { %424 = vmatprep.subr.bf16.mxu0 %v546_v0  ;;  %432 = vmatprep.subr.bf16.mxu1 %v546_v0  ;;  %v485_v13 = vld [vmem:[#allocation2] sm:$0xff]   ;;  %v486_v14 = vld [vmem:[#allocation4 + $0x38] sm:$0xff]   ;;  %v487_v15 = vld [vmem:[#allocation4 + $0x30] sm:$0xff]   ;;  %vm358_vm2 = vcmp.ge.s32.totalorder %v357_v50, 8  ;;  %vm359_vm3 = vcmp.lt.s32.totalorder %v357_v50, 16 }
  0x20   :  { %v488_v16 = vld [vmem:[#allocation4 + $0x28] sm:$0xff]   ;;  %v489_v17 = vld [vmem:[#allocation4 + $0x20] sm:$0xff]   ;;  %v490_v18 = vld [vmem:[#allocation4 + $0x18] sm:$0xff]  }
  0x21   :  { %v379_v19 = vld [vmem:[%s647_s2] ss:$0 sm:$0xff]  ;;  %v491_v29 = vld [vmem:[#allocation4 + $0x10] sm:$0xff]   ;;  %v492_v30 = vld [vmem:[#allocation4 + $0x8] sm:$0xff]  }
  0x22   :  { %425 = vmatpush3.bf16.msra.mxu0 %v477_v2  ;;  %433 = vmatpush3.bf16.msra.mxu1 %v479_v7  ;;  %v493_v31 = vld [vmem:[#allocation4] sm:$0xff]   ;;  %vm360_vm4 = vmand %vm358_vm2, %vm359_vm3 }
  0x23   :  { %450 = vmatprep.subr.bf16.mxu0 %v546_v0  ;;  %434 = vmatprep.subr.bf16.mxu1 %v546_v0  ;;  %v383_v32 = vld [vmem:[%s649_s4] ss:$0 sm:$0xff] }
  0x24   :  { %v392_v42 = vld [vmem:[%s651_s6] ss:$0 sm:$0xff] }
  0x25   :  { %427 = vmatmul.mubr.msk.bf16.vlgmr.msra.gmra.mxu0 %vm81_vm1, %v57_v6 }
  0x26   :  { %466 = vmatprep.mubr.msk.bf16.mxu0 %vm547_vm0, %v546_v0  ;;  %435 = vmatpush3.bf16.msra.mxu1 %v480_v8 }
  0x27   :  { %436 = vmatprep.subr.bf16.mxu1 %v546_v0  ;;  %451 = vmatpush3.bf16.msra.mxu0 %v486_v14 }
  0x28   :  { %452 = vmatprep.subr.bf16.mxu0 %v546_v0 }
  0x2a   :  { %437 = vmatpush3.bf16.msra.mxu1 %v481_v9 }
  0x2b   :  { %438 = vmatprep.subr.bf16.mxu1 %v546_v0  ;;  %453 = vmatpush3.bf16.msra.mxu0 %v487_v15 }
  0x2c   :  { %454 = vmatprep.subr.bf16.mxu0 %v546_v0 }
  0x2e   :  { %439 = vmatpush3.bf16.msra.mxu1 %v482_v10 }
  0x2f   :  { %440 = vmatprep.subr.bf16.mxu1 %v546_v0  ;;  %455 = vmatpush3.bf16.msra.mxu0 %v488_v16 }
  0x30   :  { %456 = vmatprep.subr.bf16.mxu0 %v546_v0 }
  0x32   :  { %441 = vmatpush3.bf16.msra.mxu1 %v483_v11 }
  0x33   :  { %442 = vmatprep.subr.bf16.mxu1 %v546_v0  ;;  %457 = vmatpush3.bf16.msra.mxu0 %v489_v17 }
  0x34   :  { %458 = vmatprep.subr.bf16.mxu0 %v546_v0 }
  0x36   :  { %443 = vmatpush3.bf16.msra.mxu1 %v484_v12 }
  0x37   :  { %444 = vmatprep.subr.bf16.mxu1 %v546_v0  ;;  %459 = vmatpush3.bf16.msra.mxu0 %v490_v18 }
  0x38   :  { %460 = vmatprep.subr.bf16.mxu0 %v546_v0 }
  0x3a   :  { %445 = vmatpush3.bf16.msra.mxu1 %v485_v13 }
  0x3b   :  { %461 = vmatpush3.bf16.msra.mxu0 %v491_v29 }
  0x3c   :  { %462 = vmatprep.subr.bf16.mxu0 %v546_v0 }
  0x3f   :  { %463 = vmatpush3.bf16.msra.mxu0 %v492_v30 }
  0x40   :  { %464 = vmatprep.subr.bf16.mxu0 %v546_v0 }
  0x43   :  { %465 = vmatpush3.bf16.msra.mxu0 %v493_v31 }
  0xe5   :  { %v119_v20 = vpop.f32.mrf.mxu0 }
  0xe6   :  { %v120_v22 = vadd.f32 %v379_v19, %v119_v20 }
  0xe7   :  { %v428_v21 = vpop.f32.mrf.mxu0 }
  0xe8   :  { %v126_v26 = vmax.f32 %v120_v22, 0.0 }
  0xe9   :  { %v122_v23 = vpop.f32.mrf.mxu0 }
  0xea   :  { %v123_v24 = vadd.f32 %v379_v19, %v122_v23 }
  0xeb   :  { %v429_v25 = vpop.f32.mrf.mxu0 }
  0xec   :  { %v127_v27 = vmax.f32 %v123_v24, 0.0 }
  0xee   :  { %v128_v28 = vpack.c.bf16 %v127_v27, %v126_v26 }
  0xf0   :  { %447 = vmatmul.mubr.bf16.vlgmr.msra.gmra.mxu1 %v128_v28 }
 0x1b0   :  { %v234_v33 = vpop.f32.mrf.mxu1 }
 0x1b1   :  { %v235_v35 = vadd.f32 %v383_v32, %v234_v33 }
 0x1b2   :  { %v448_v34 = vpop.f32.mrf.mxu1 }
 0x1b3   :  { %v241_v39 = vmax.f32 %v235_v35, 0.0 }
 0x1b4   :  { %v237_v36 = vpop.f32.mrf.mxu1 }
 0x1b5   :  { %v238_v37 = vadd.f32 %v383_v32, %v237_v36 }
 0x1b6   :  { %v449_v38 = vpop.f32.mrf.mxu1 }
 0x1b7   :  { %v242_v40 = vmax.f32 %v238_v37, 0.0 }
 0x1b9   :  { %v243_v41 = vpack.c.bf16 %v242_v40, %v241_v39 }
 0x1bb   :  { %467 = vmatmul.mubr.bf16.vlgmr.msra.gmra.mxu0 %v243_v41 }
 0x27b   :  { %v349_v43 = vpop.f32.mrf.mxu0 }
 0x27c   :  { %v350_v44 = vadd.f32 %v392_v42, %v349_v43 }
 0x27d   :  { %v468_v45 = vpop.f32.mrf.mxu0 }
 0x27e   :  { %494 = vtanh.f32 %v350_v44 }
 0x27f   :  { %v352_v46 = vpop.f32.mrf.mxu0 }
 0x280   :  { %v353_v47 = vadd.f32 %v392_v42, %v352_v46 }
 0x281   :  { %v469_v48 = vpop.f32.mrf.mxu0 }
 0x282   :  { %496 = vtanh.f32 %v353_v47 }
 0x28b   :  { %v495_v51 = vpop.eup %494 }
 0x28c   :  { %v363_v52 = vadd.f32 1.0, %v495_v51 }
 0x28e   :  { %v365_v53 = vmul.f32 3.5, %v363_v52 }
 0x28f   :  { %v497_v54 = vpop.eup %496 }
 0x290   :  { %v367_v55 = vadd.f32 -5.0, %v365_v53  ;;  %v364_v56 = vadd.f32 1.0, %v497_v54 }
 0x292   :  { %v369_v57 = vsel %vm360_vm4, %v367_v55, %v350_v44  ;;  %v366_v58 = vmul.f32 3.5, %v364_v56 }
 0x293   :  { %371 = vst [vmem:[%s652_s7] sm:$0xff] %v369_v57 }
 0x294   :  { %v368_v59 = vadd.f32 -5.0, %v366_v58 }
 0x296   :  { %v370_v60 = vsel %vm360_vm4, %v368_v59, %v353_v47 }
 0x297   :  { %372 = vst [vmem:[%s652_s7 + $0x8] sm:$0xff] %v370_v60 }
 0x298   :  { %377 = vsyncpa [#allocation3], 1 }
 0x299   :  { %378 = vsyncpa [#allocation5], 1 }

</bundles_post_ra>
